<compile_context>
chip_gen: v6e
topology: v6e:2x2x1
jax: 0.10.0
libtpu: 0.0.40
codegen_flags: <defaults>
</compile_context>

<pallas_src>
import jax
import jax.numpy as jnp
from jax.experimental import pallas as pl
from jax.experimental.pallas import tpu as pltpu


def _round_up(a, b):
    return ((a + b - 1) // b) * b


def _complex_kernel(x_ref, ent_ref, out_ref):
    # x_ref: (B, D) f32, resident across the grid (pre-folded 2*BN0(e1)*rel).
    # ent_ref: (D, tile_n) entity tile, lane-dense along N (the output axis).
    # Only the MXU operand is cast to the entity storage dtype; accumulation
    # and the sigmoid stay in f32 (required on v5e, harmless elsewhere).
    x = x_ref[...].astype(ent_ref.dtype)
    score = jnp.dot(x, ent_ref[...], preferred_element_type=jnp.float32)
    out_ref[...] = jax.nn.sigmoid(score).astype(out_ref.dtype)


def fold_bn0(bn0_gamma, bn0_beta, bn0_mean, bn0_var, eps=1e-5):
    """Fold eval-mode BatchNorm1d AND the ComplEx factor of 2 into one affine."""
    inv = bn0_gamma.astype(jnp.float32) / jnp.sqrt(bn0_var.astype(jnp.float32) + eps)
    s0 = 2.0 * inv
    b0 = 2.0 * (bn0_beta.astype(jnp.float32) - bn0_mean.astype(jnp.float32) * inv)
    return s0, b0


def prepare_entity_table(all_ent_emb, *, tile_n=8192, ent_dtype=jnp.bfloat16):
    """One-time prep: transpose to (D, N), cast, pad N to a tile multiple.

    Call ONCE per eval run and reuse the result across many
    `complex_forward_prepared` calls (amortizes the transpose/cast pass).
    Returns (ent_t_padded (D, N_pad), n_entities, tile_n_eff).
    """
    N, D = all_ent_emb.shape
    tn = min(int(tile_n), _round_up(N, 128))
    tn = _round_up(tn, 128)          # lane-aligned tiles -> unmasked loads/stores
    n_pad = _round_up(N, tn)         # ragged N supported via zero padding
    ent_t = all_ent_emb.T.astype(ent_dtype)
    if n_pad != N:
        ent_t = jnp.pad(ent_t, ((0, 0), (0, n_pad - N)))
    return ent_t, N, tn


def complex_forward_prepared(e1_emb, rel_emb, s0, b0, ent_t_pad, n_entities,
                             tile_n, *, out_dtype=jnp.float32):
    """Fast path: entity table already transposed / cast / padded."""
    B, D = e1_emb.shape
    Dp, Np = ent_t_pad.shape
    assert D == Dp, "embedding dim mismatch"
    assert Np % tile_n == 0 and (tile_n == Np or tile_n % 128 == 0)

    # x = 2 * BN0(e1) * rel ; tiny (B, D) f32 elementwise op done in XLA so the
    # kernel carries only two inputs (no sub-(8,128) blocks, fewer descriptors).
    x = (e1_emb.astype(jnp.float32) * s0 + b0) * rel_emb.astype(jnp.float32)

    ent_bytes = jnp.dtype(ent_t_pad.dtype).itemsize
    out_bytes = jnp.dtype(out_dtype).itemsize

    # Double-buffered working set: keep well under v7x's 64 MiB physical VMEM.
    vmem_need = 2 * tile_n * (D * ent_bytes + B * out_bytes) + 2 * B * D * 4
    if vmem_need > 56 * 1024 * 1024:
        raise ValueError(
            f"tile_n={tile_n}, B={B} needs ~{vmem_need >> 20} MiB VMEM; "
            "reduce tile_n (v7x physical VMEM is 64 MiB per TensorCore).")
    vmem_limit = (int(vmem_need + (4 << 20))
                  if vmem_need > 12 * 1024 * 1024 else None)

    grid = (Np // tile_n,)
    cost = pl.CostEstimate(
        flops=2 * B * Np * D,
        transcendentals=B * Np,                                   # sigmoid
        bytes_accessed=D * Np * ent_bytes + B * Np * out_bytes + B * D * 4,
    )

    pred = pl.pallas_call(
        _complex_kernel,
        out_shape=jax.ShapeDtypeStruct((B, Np), out_dtype),
        grid_spec=pltpu.PrefetchScalarGridSpec(
            num_scalar_prefetch=0,
            grid=grid,
            in_specs=[
                pl.BlockSpec((B, D), lambda j: (0, 0)),        # x, resident
                pl.BlockSpec((D, tile_n), lambda j: (0, j)),   # entity tile
            ],
            out_specs=pl.BlockSpec((B, tile_n), lambda j: (0, j)),
        ),
        compiler_params=pltpu.CompilerParams(
            dimension_semantics=("parallel",),   # shards tiles across TCs on v7x
            vmem_limit_bytes=vmem_limit),
        cost_estimate=cost,
    )(x, ent_t_pad)

    if n_entities != Np:
        pred = pred[:, :n_entities]              # drop padded (garbage) columns
    return pred


def complex_forward(e1_emb, rel_emb, all_ent_emb,
                    bn0_gamma, bn0_beta, bn0_mean, bn0_var,
                    bn1_gamma=None, bn1_beta=None, bn1_mean=None, bn1_var=None,
                    *, eps=1e-5, tile_n=8192, ent_dtype=jnp.bfloat16,
                    out_dtype=jnp.float32):
    """Convenience wrapper matching the PyTorch forward signature.

    For an eval loop, call prepare_entity_table / fold_bn0 once and use
    complex_forward_prepared directly to amortize the table prep.
    """
    # bn1_* accepted for interface parity; the imaginary-entity terms cancel
    # exactly in this module (shared entity table, re_rel == im_rel), so bn1
    # has no effect on the output.
    del bn1_gamma, bn1_beta, bn1_mean, bn1_var
    s0, b0 = fold_bn0(bn0_gamma, bn0_beta, bn0_mean, bn0_var, eps)
    ent_t_pad, n_ent, tn = prepare_entity_table(
        all_ent_emb, tile_n=tile_n, ent_dtype=ent_dtype)
    return complex_forward_prepared(e1_emb, rel_emb, s0, b0, ent_t_pad, n_ent,
                                    tn, out_dtype=out_dtype)


if __name__ == "__main__":
    # Small shapes consistent with the module (ent_embed_dim = rel_embed_dim).
    B = 16          # batch (multiple of 16 -> bf16 output tiles stay unmasked)
    D = 32          # embedding dim
    N = 1000        # number of entities (non-multiple of 128 -> exercises padding)
    tile_n = 512    # padded to 1024 -> 2 grid steps, exercises streaming

    key = jax.random.PRNGKey(0)
    k1, k2, k3, k4, k5, k6 = jax.random.split(key, 6)
    e1_emb = jax.random.normal(k1, (B, D), dtype=jnp.float32)
    rel_emb = jax.random.normal(k2, (B, D), dtype=jnp.float32)
    all_ent_emb = jax.random.normal(k3, (N, D), dtype=jnp.float32)

    # Non-trivial eval-mode BatchNorm1d parameters / running stats for bn0.
    bn0_gamma = 1.0 + 0.1 * jax.random.normal(k4, (D,), jnp.float32)
    bn0_beta = 0.05 * jax.random.normal(k5, (D,), jnp.float32)
    bn0_mean = 0.1 * jax.random.normal(k6, (D,), jnp.float32)
    bn0_var = jnp.linspace(0.5, 1.5, D).astype(jnp.float32)
    # bn1 parameters exist in the module but provably cancel (re_rel == im_rel).
    bn1_gamma = jnp.ones((D,), jnp.float32)
    bn1_beta = jnp.zeros((D,), jnp.float32)
    bn1_mean = jnp.zeros((D,), jnp.float32)
    bn1_var = jnp.ones((D,), jnp.float32)

    # Pure-JAX reference with the original four-matmul formulation.
    eps = 1e-5
    re_e1 = (e1_emb - bn0_mean) / jnp.sqrt(bn0_var + eps) * bn0_gamma + bn0_beta
    im_e1 = (e1_emb - bn1_mean) / jnp.sqrt(bn1_var + eps) * bn1_gamma + bn1_beta
    et = all_ent_emb.T
    ref = jax.nn.sigmoid((re_e1 * rel_emb) @ et + (re_e1 * rel_emb) @ et
                         + (im_e1 * rel_emb) @ et - (im_e1 * rel_emb) @ et)

    # --- Path 1: f32 entity storage, f32 output -> tight correctness check ---
    pred_f32 = complex_forward(e1_emb, rel_emb, all_ent_emb,
                               bn0_gamma, bn0_beta, bn0_mean, bn0_var,
                               bn1_gamma, bn1_beta, bn1_mean, bn1_var,
                               tile_n=tile_n, ent_dtype=jnp.float32,
                               out_dtype=jnp.float32)
    pred_f32 = jax.block_until_ready(pred_f32)
    assert pred_f32.shape == (B, N)
    assert jnp.allclose(pred_f32, ref, atol=1e-5, rtol=1e-5)

    # --- Path 2: default bf16 entity storage (prepared once), bf16 output ---
    s0, b0 = fold_bn0(bn0_gamma, bn0_beta, bn0_mean, bn0_var, eps)
    ent_bf16, n_ent, tn = prepare_entity_table(all_ent_emb, tile_n=tile_n,
                                               ent_dtype=jnp.bfloat16)
    pred_bf16 = complex_forward_prepared(e1_emb, rel_emb, s0, b0, ent_bf16,
                                         n_ent, tn, out_dtype=jnp.bfloat16)
    pred_bf16 = jax.block_until_ready(pred_bf16)
    assert pred_bf16.shape == (B, N)
    # bf16 storage changes scores at ~3 decimal digits; loose check on sigmoid.
    assert jnp.max(jnp.abs(pred_bf16.astype(jnp.float32) - ref)) < 0.05

    print("KERNEL_OK")
</pallas_src>

<mosaic_0001>
module attributes {stable_mosaic.version = 11 : i64} {
  func.func @_complex_kernel(%arg0: i32, %arg1: memref<16x32xf32, #tpu.memory_space<vmem>>, %arg2: memref<32x512xf32, #tpu.memory_space<vmem>>, %arg3: memref<16x512xf32, #tpu.memory_space<vmem>>) attributes {dimension_semantics = [#tpu.dimension_semantics<parallel>], iteration_bounds = array<i64: 2>, scalar_prefetch = 0 : i64, scratch_operands = 0 : i64, tpu.core_type = #tpu.core_type<tc>, window_params = [{pipeline_mode = #tpu.pipeline_mode<synchronous>, transform_indices = @transform_0, window_bounds = array<i64: 16, 32>}, {transform_indices = @transform_1, window_bounds = array<i64: 32, 512>}, {transform_indices = @transform_2, window_bounds = array<i64: 16, 512>}]} {
    %c0 = arith.constant 0 : index
    %c0_0 = arith.constant 0 : index
    %0 = vector.load %arg1[%c0, %c0_0] : memref<16x32xf32, #tpu.memory_space<vmem>>, vector<16x32xf32>
    %c0_1 = arith.constant 0 : index
    %c0_2 = arith.constant 0 : index
    %1 = vector.load %arg2[%c0_1, %c0_2] : memref<32x512xf32, #tpu.memory_space<vmem>>, vector<32x512xf32>
    %cst = arith.constant dense<0.000000e+00> : vector<16x512xf32>
    %2 = tpu.matmul %0, %1, %cst {dimension_numbers = #tpu.dot_dimension_numbers<[1], [0], [0], [1], [0, 0, 1, 1], [], []>} : vector<16x32xf32>, vector<32x512xf32>, vector<16x512xf32> -> vector<16x512xf32>
    %3 = arith.negf %2 : vector<16x512xf32>
    %4 = math.exp %3 : vector<16x512xf32>
    %cst_3 = arith.constant 1.000000e+00 : f32
    %5 = vector.broadcast %cst_3 : f32 to vector<16x512xf32>
    %6 = arith.addf %5, %4 : vector<16x512xf32>
    %7 = arith.divf %5, %6 : vector<16x512xf32>
    %c0_4 = arith.constant 0 : index
    %c0_5 = arith.constant 0 : index
    %8 = vector.load %arg3[%c0_4, %c0_5] : memref<16x512xf32, #tpu.memory_space<vmem>>, vector<16x512xf32>
    tpu.vector_store %arg3[%c0_4, %c0_5], %7 {strides = array<i32>} : memref<16x512xf32, #tpu.memory_space<vmem>>, vector<16x512xf32>,
    return
  }
  func.func @transform_0(%arg0: i32) -> (i32, i32) {
    %c0_i32 = arith.constant 0 : i32
    %c0_i32_0 = arith.constant 0 : i32
    %c0_i32_1 = arith.constant 0 : i32
    return %c0_i32, %c0_i32_0 : i32, i32
  }
  func.func @transform_1(%arg0: i32) -> (i32, i32) {
    %c0_i32 = arith.constant 0 : i32
    %c0_i32_0 = arith.constant 0 : i32
    return %c0_i32, %arg0 : i32, i32
  }
  func.func @transform_2(%arg0: i32) -> (i32, i32) {
    %c0_i32 = arith.constant 0 : i32
    %c0_i32_0 = arith.constant 0 : i32
    return %c0_i32, %arg0 : i32, i32
  }
}

</mosaic_0001>

<bundles_post_ra>
// kernel: tpu_custom_call.1
= control target key start
LH: loop header
LB: loop body
LE: loop exit
PB: predicated region body
PF: predicated region fallthrough
CT: control target
= control target key end

     0   :  { %7 = vsyncpa [#allocation3], 0  ;;  %s994_s0 = inlined_call_operand.hbm [shape: f32[16,32], index: 0, kind: input, shape index: {}]   ;;  %s995_s1 = inlined_call_operand.hbm [shape: f32[32,1024], index: 1, kind: input, shape index: {}]   ;;  %s996_s2 = inlined_call_operand.hbm [shape: f32[16,1024], index: 2, kind: output, shape index: {}]  }
   0x1   :  { %8 = vsyncpa [#allocation6], 0 }
   0x2   :  { %10 = vsyncpa [#allocation6 + $0x1], 0 }
   0x3   :  { %11 = vsyncpa [#allocation4], 0 }
   0x4   :  { %13 = vsyncpa [#allocation4 + $0x1], 0  ;;  %s792_s9 = smov 0   ;;  %s794_s10 = smov 0  }
   0x5   :  { %s796_s11 = smov 0   ;;  %s798_s12 = smov 0  }
   0x6 LB: > { %s813_s13 = sadd.s32 4294967295, %s763_s12   ;;  %s513_s14 = sadd.s32 4294967294, %s763_s12   ;;  %s763_s12 = sphi %s798_s12, %s1018_s12   ;;  %s759_s11 = sphi %s796_s11, %s1017_s11   ;;  %s755_s10 = sphi %s794_s10, %s1016_s10   ;;  %s751_s9 = sphi %s792_s9, %s1015_s9  }
   0x7   : > { %s817_s15 = sadd.s32 1, %s763_s12   ;;  %s47_s16 = sadd.s32 1, %s759_s11 }
   0x8   : > { %s44_s17 = ssub.s32 %s763_s12, %s817_s15  ;;  %p54_p0 = scmp.ne.s32.totalorder %s759_s11, %s755_s10 }
   0x9   : > { %p45_p1 = scmp.eq.s32.totalorder %s44_s17, 0  ;;  %p55_p2 = scmp.eq.s32.totalorder %s763_s12, 0 }
   0xa   : > { %p60_p3 = scmp.ne.s32.totalorder %s755_s10, %s751_s9  ;;  %p1000_p4 = scmp.eq.s32.totalorder %s813_s13, 0 }
   0xb   : > { %s829_s18 = scalar_select %p45_p1, %s759_s11, %s47_s16  }
   0xc   : > { %p831_p5 = por %p55_p2, %p54_p0  ;;  %p837_p6 = por %p1000_p4, %p60_p3 }
   0xd   : > { %p84_p7 = scmp.eq.s32.totalorder %s813_s13, 1  ;;  %p90_p8 = scmp.eq.s32.totalorder %s513_s14, 1 }
   0xe   : > { %s1002_s20 = scalar_select %p837_p6, 1, 0 }
   0xf   : > { %p514_p9 = scmp.ge.s32.totalorder %s763_s12, 1  ;;  %p97_p10 = scmp.lt.s32.totalorder %s763_s12, 3 }
  0x10   : > { %p844_p11 = por %p84_p7, %p54_p0  ;;  %p848_p12 = por %p90_p8, %p60_p3 }
  0x11   : > { %p852_p13 = pnand %p514_p9, %p97_p10  ;;  %s765_s24 = smov [#allocation2]  }
  0x12   : > { %s1003_s21 = scalar_select %p844_p11, 1, 0 }
  0x13   : > { %s1004_s22 = scalar_select %p848_p12, 1, 0 }
  0x14   : > { %s1005_s23 = scalar_select %p852_p13, 1, 0 }
  0x15   : > { %p551_p1 = pneg %p852_p13  ;;  %s109_s25 = sshll.u32 %s765_s24, 4  ;;  %s110_s25 = int_to_ptr.vmem [resolvable:$true] %s109_s25 }
  0x16   : > { %p564_p3 = scmp.lt.s32.totalorder %s763_s12, 2  ;;  %s123_s27 = sand.u32 1, %s759_s11  }
  0x17   : > { %p860_p2 = pnand %p551_p1, %p1000_p4  ;;  %s652_s28 = scalar_lea.vmem %s110_s25, 256 }
  0x18   : > { %p653_p8 = scmp.ne.s32.totalorder %s110_s25, %s652_s28  ;;  %p660_p12 = scmp.lt.s32.totalorder %s110_s25, %s110_s25 }
  0x19   : > { %p643_p7 = pneg %p860_p2  ;;  %p661_p11 = scmp.lt.s32.totalorder %s652_s28, %s652_s28 }
  0x1b   : > { %p655_p9 = pnand %p653_p8, %p643_p7  ;;  %p662_p6 = por %p661_p11, %p660_p12 }
  0x1d   : > { %p656_p10 = pneg %p655_p9 }
  0x1f   : > { %p663_p13 = pnand %p662_p6, %p656_p10 }
  0x21   : > { %666 = shalt.err (!%p663_p13)
}
  0x22   : > { %s766_s29 = smov 128   ;;  %s767_s30 = smov 8  }
  0x23   : > { %554 = dma.hbm_to_vmem [thread:$0]  (!%p860_p2), %s994_s0, 256, %s110_s25, [#allocation3], %s766_s29, %s766_s29, %s767_s30  }
  0x24   : > { %p878_p1 = pnand %p564_p3, %p831_p5  ;;  %s517_s6 = sshll.u32 %s123_s27, 7 }
  0x25   : > { %s541_s7 = sshll.u32 %s763_s12, 9  ;;  %s127_s17 = scalar_lea.vmem [#allocation5], %s517_s6 }
  0x26   : > { %s886_s16 = scalar_lea.hbm %s995_s1, %s541_s7  ;;  %s134_s24 = sshll.u32 %s127_s17, 4  ;;  %s888_s24 = int_to_ptr.vmem [resolvable:$true] %s134_s24 }
  0x27   : > { %s890_s19 = scalar_lea.sflag [#allocation6], %s123_s27  ;;  %s667_s25 = scalar_lea.hbm %s886_s16, 2048 }
  0x28   : > { %p668_p5 = scmp.ne.s32.totalorder %s886_s16, %s667_s25  ;;  %p669_p6 = pneg %p878_p1 }
  0x29   : > { %s672_s29 = scalar_lea.hbm %s995_s1, 4096  ;;  %p673_p13 = scmp.lt.s32.totalorder %s886_s16, %s995_s1 }
  0x2a   : > { %p670_p11 = pnand %p669_p6, %p668_p5  ;;  %p674_p2 = scmp.lt.s32.totalorder %s672_s29, %s667_s25 }
  0x2c   : > { %p671_p12 = pneg %p670_p11  ;;  %p675_p3 = por %p674_p2, %p673_p13 }
  0x2e   : > { %p676_p7 = pnand %p675_p3, %p671_p12 }
  0x30   : > { %679 = shalt.err (!%p676_p7)
}
  0x31   : > { %s680_s27 = scalar_lea.vmem %s888_s24, 2048  ;;  %s768_s4 = smov [#allocation5]  }
  0x32   : > { %p681_p8 = scmp.ne.s32.totalorder %s888_s24, %s680_s27  ;;  %s685_s6 = sshll.u32 %s768_s4, 4  ;;  %s686_s6 = int_to_ptr.vmem [resolvable:$false] %s685_s6 }
  0x33   : > { %s687_s7 = scalar_lea.vmem %s686_s6, 4096  ;;  %p688_p5 = scmp.lt.s32.totalorder %s888_s24, %s686_s6 }
  0x34   : > { %p683_p9 = pnand %p681_p8, %p669_p6  ;;  %p689_p11 = scmp.lt.s32.totalorder %s687_s7, %s680_s27 }
  0x36   : > { %p684_p10 = pneg %p683_p9  ;;  %p690_p0 = por %p689_p11, %p688_p5 }
  0x38   : > { %p691_p4 = pnand %p690_p0, %p684_p10 }
  0x3a   : > { %694 = shalt.err (!%p691_p4)
}
  0x3b   : > { %s769_s8 = smov 1024   ;;  %s770_s14 = smov 512  }
  0x3c   : > { %s771_s17 = smov 32   ;;  %p1008_p6 = scmp.ne.s32.totalorder %s1005_s23, 0 }
  0x3d   : > { %558 = dma.hbm_to_vmem [thread:$0]  (!%p878_p1), %s886_s16, 2048, %s888_s24, %s890_s19, %s769_s8, %s770_s14, %s771_s17  }
  0x3e   : > { %146 = sbr.rel (%p1008_p6) target bundleno = 329 (0x149), region = 28  ;;  %p1009_p12 = scmp.eq.s32.totalorder (!%p1008_p6), %s813_s13, 0 }
  0x43   : > { %738 = dma.done.wait (%p1009_p12), [#allocation3], 256   ;;  %p1010_p13 = pmov %p1009_p12 }
  0x44   : > { %s918_s25 = sand.u32 1, %s755_s10   ;;  %p1011_p4 = scmp.ne.s32.totalorder %s1002_s20, 0 }
  0x45   : > { %740 = vsyncadd (%p1010_p13), [#allocation3], 4294967040  ;;  %s522_s26 = sshll.u32 %s918_s25, 7  ;;  %s153_s28 = scalar_lea.sflag [#allocation6], %s918_s25 }
  0x46   : > { %s922_s29 = scalar_lea.vmem [#allocation5], %s522_s26 }
  0x47   : > { %742 = dma.done.wait (%p1011_p4), %s153_s28, 2048  }
  0x48   : > { %744 = vsyncadd (%p1011_p4), %s153_s28, 4294965248  ;;  %v772_v0 = vmov 0.0   ;;  %v194_v1 = vld [vmem:[%s922_s29 + $0x68] sm:$0xff]  ;;  %v196_v2 = vld [vmem:[%s922_s29 + $0x78] sm:$0xff]  ;;  %vm197_vm0 = vcmask 261120   ;;  %s523_s20 = sshll.u32 %s918_s25, 6 }
  0x49   : > { %268 = vmatprep.mubr.f32.mxu0 %v772_v0  ;;  %345 = vmatprep.mubr.f32.mxu1 %v772_v0  ;;  %v193_v3 = vld [vmem:[%s922_s29 + $0x60] sm:$0xff]  ;;  %v195_v4 = vld [vmem:[%s922_s29 + $0x70] sm:$0xff]  ;;  %v190_v5 = vld [vmem:[%s922_s29 + $0x48] sm:$0xff]  ;;  %s176_s23 = scalar_lea.vmem [#allocation7], %s523_s20  ;;  %s542_s5 = sshll.u32 %s813_s13, 9 }
  0x4a   : > { %228 = vmatprep.subr.mxu0 %v194_v1  ;;  %305 = vmatprep.subr.mxu1 %v196_v2  ;;  %v192_v6 = vld [vmem:[%s922_s29 + $0x58] sm:$0xff]  ;;  %v189_v7 = vld [vmem:[%s922_s29 + $0x40] sm:$0xff]  ;;  %v191_v8 = vld [vmem:[%s922_s29 + $0x50] sm:$0xff]  ;;  %s428_s16 = sshll.u32 %s176_s23, 4  ;;  %s949_s30 = scalar_lea.hbm %s996_s2, %s542_s5  ;;  %s951_s16 = int_to_ptr.vmem [resolvable:$true] %s428_s16 }
  0x4b   : > { %229 = vmatpush1.msra.mxu0 %v193_v3  ;;  %306 = vmatpush1.msra.mxu1 %v195_v4  ;;  %v186_v9 = vld [vmem:[%s922_s29 + $0x28] sm:$0xff]  ;;  %v188_v10 = vld [vmem:[%s922_s29 + $0x38] sm:$0xff]  ;;  %v185_v11 = vld [vmem:[%s922_s29 + $0x20] sm:$0xff]  ;;  %s415_s13 = scalar_lea.sflag [#allocation4], %s918_s25  ;;  %s695_s3 = scalar_lea.vmem %s951_s16, 1024 }
  0x4c   : > { %230 = vmatprep.subr.mxu0 %v190_v5  ;;  %307 = vmatprep.subr.mxu1 %v192_v6  ;;  %v187_v12 = vld [vmem:[%s922_s29 + $0x30] sm:$0xff]  ;;  %v182_v13 = vld [vmem:[%s922_s29 + $0x8] sm:$0xff]  ;;  %v184_v14 = vld [vmem:[%s922_s29 + $0x18] sm:$0xff]  ;;  %p696_p0 = scmp.ne.s32.totalorder %s951_s16, %s695_s3  ;;  %p1012_p1 = scmp.ne.s32.totalorder %s1003_s21, 0 }
  0x4d   : > { %231 = vmatpush1.msra.mxu0 %v189_v7  ;;  %308 = vmatpush1.msra.mxu1 %v191_v8  ;;  %v181_v15 = vld [vmem:[%s922_s29] sm:$0xff]  ;;  %v183_v16 = vld [vmem:[%s922_s29 + $0x10] sm:$0xff]  ;;  %v180_v18 = vld [vmem:[#allocation2 + $0x8] sm:$0xff]  ;;  %s773_s27 = smov [#allocation7]  }
  0x4e   : > { %232 = vmatprep.subr.mxu0 %v186_v9  ;;  %309 = vmatprep.subr.mxu1 %v188_v10  ;;  %v179_v17 = vld [vmem:[#allocation2] sm:$0xff]  ;;  %p697_p2 = pnand %p696_p0, %p1012_p1  ;;  %s699_s4 = sshll.u32 %s773_s27, 4  ;;  %s700_s4 = int_to_ptr.vmem [resolvable:$false] %s699_s4 }
  0x4f   : > { %233 = vmatpush1.msra.mxu0 %v185_v11  ;;  %310 = vmatpush1.msra.mxu1 %v187_v12  ;;  %s701_s6 = scalar_lea.vmem %s700_s4, 2048  ;;  %p702_p7 = scmp.lt.s32.totalorder %s951_s16, %s700_s4 }
  0x50   : > { %234 = vmatprep.subr.mxu0 %v182_v13  ;;  %311 = vmatprep.subr.mxu1 %v184_v14  ;;  %p698_p3 = pneg %p697_p2  ;;  %p703_p8 = scmp.lt.s32.totalorder %s701_s6, %s695_s3 }
  0x51   : > { %235 = vmatpush1.msra.mxu0 %v181_v15  ;;  %312 = vmatpush1.msra.mxu1 %v183_v16 }
  0x52   : > { %524 = vmatmul.mubr.msk.f32.vlgmr.msra.gmra.mxu0 %vm197_vm0, %v179_v17  ;;  %526 = vmatmul.mubr.msk.f32.vlgmr.msra.gmra.mxu1 %vm197_vm0, %v179_v17  ;;  %p704_p9 = por %p703_p8, %p702_p7 }
  0x53   : > { %274 = vmatprep.mubr.f32.mxu0 %v772_v0  ;;  %351 = vmatprep.mubr.f32.mxu1 %v772_v0 }
  0x54   : > { %p705_p10 = pnand %p704_p9, %p698_p3 }
  0x56   : > { %525 = vmatmul.mubr.msk.f32.gmra.mxu0 %vm197_vm0, %v180_v18  ;;  %527 = vmatmul.mubr.msk.f32.gmra.mxu1 %vm197_vm0, %v180_v18 }
 0x112   : > { %v270_v19 = vpop.f32.mrf.mxu0  ;;  %v347_v20 = vpop.f32.mrf.mxu1 }
 0x113   : > { %v528_v21 = vmul.f32 -1.442695, %v270_v19  ;;  %v530_v22 = vmul.f32 -1.442695, %v347_v20 }
 0x114   : > { %v272_v23 = vpop.f32.mrf.mxu0  ;;  %v349_v24 = vpop.f32.mrf.mxu1 }
 0x115   : > { %609 = vpow2.f32 %v528_v21  ;;  %v529_v25 = vmul.f32 -1.442695, %v272_v23  ;;  %v531_v26 = vmul.f32 -1.442695, %v349_v24 }
 0x116   : > { %611 = vpow2.f32 %v530_v22  ;;  %v276_v27 = vpop.f32.mrf.mxu0  ;;  %v353_v28 = vpop.f32.mrf.mxu1 }
 0x117   : > { %613 = vpow2.f32 %v529_v25  ;;  %v532_v29 = vmul.f32 -1.442695, %v276_v27  ;;  %v534_v30 = vmul.f32 -1.442695, %v353_v28 }
 0x118   : > { %615 = vpow2.f32 %v531_v26  ;;  %v278_v31 = vpop.f32.mrf.mxu0  ;;  %v355_v32 = vpop.f32.mrf.mxu1 }
 0x119   : > { %617 = vpow2.f32 %v532_v29  ;;  %v533_v33 = vmul.f32 -1.442695, %v278_v31  ;;  %v535_v34 = vmul.f32 -1.442695, %v355_v32 }
 0x11a   : > { %619 = vpow2.f32 %v534_v30 }
 0x11b   : > { %621 = vpow2.f32 %v533_v33 }
 0x11c   : > { %623 = vpow2.f32 %v535_v34 }
 0x122   : > { %v610_v35 = vpop.eup %609 }
 0x123   : > { %v612_v36 = vpop.eup %611  ;;  %v382_v37 = vadd.f32 1.0, %v610_v35 }
 0x124   : > { %v614_v38 = vpop.eup %613  ;;  %v384_v39 = vadd.f32 1.0, %v612_v36 }
 0x125   : > { %v616_v40 = vpop.eup %615  ;;  %625 = vrcp.f32 %v382_v37  ;;  %v383_v41 = vadd.f32 1.0, %v614_v38 }
 0x126   : > { %v618_v42 = vpop.eup %617  ;;  %627 = vrcp.f32 %v384_v39  ;;  %v385_v43 = vadd.f32 1.0, %v616_v40 }
 0x127   : > { %v620_v44 = vpop.eup %619  ;;  %629 = vrcp.f32 %v383_v41  ;;  %v386_v45 = vadd.f32 1.0, %v618_v42 }
 0x128   : > { %v622_v46 = vpop.eup %621  ;;  %631 = vrcp.f32 %v385_v43  ;;  %v388_v47 = vadd.f32 1.0, %v620_v44 }
 0x129   : > { %v624_v48 = vpop.eup %623  ;;  %633 = vrcp.f32 %v386_v45  ;;  %v387_v49 = vadd.f32 1.0, %v622_v46 }
 0x12a   : > { %635 = vrcp.f32 %v388_v47  ;;  %v389_v50 = vadd.f32 1.0, %v624_v48 }
 0x12b   : > { %637 = vrcp.f32 %v387_v49 }
 0x12c   : > { %639 = vrcp.f32 %v389_v50 }
 0x132   : > { %v626_v51 = vpop.eup %625 }
 0x133   : > { %v628_v52 = vpop.eup %627  ;;  %406 = vst [vmem:[%s176_s23] sm:$0xff] %v626_v51 }
 0x134   : > { %v630_v53 = vpop.eup %629  ;;  %408 = vst [vmem:[%s176_s23 + $0x10] sm:$0xff] %v628_v52 }
 0x135   : > { %v632_v54 = vpop.eup %631  ;;  %407 = vst [vmem:[%s176_s23 + $0x8] sm:$0xff] %v630_v53 }
 0x136   : > { %v634_v55 = vpop.eup %633  ;;  %409 = vst [vmem:[%s176_s23 + $0x18] sm:$0xff] %v632_v54 }
 0x137   : > { %v636_v56 = vpop.eup %635  ;;  %410 = vst [vmem:[%s176_s23 + $0x20] sm:$0xff] %v634_v55 }
 0x138   : > { %v638_v57 = vpop.eup %637  ;;  %412 = vst [vmem:[%s176_s23 + $0x30] sm:$0xff] %v636_v56 }
 0x139   : > { %v640_v58 = vpop.eup %639  ;;  %411 = vst [vmem:[%s176_s23 + $0x28] sm:$0xff] %v638_v57 }
 0x13a   : > { %413 = vst [vmem:[%s176_s23 + $0x38] sm:$0xff] %v640_v58 }
 0x13b   : > { %708 = shalt.err (!%p705_p10)
}
 0x13c   : > { %s709_s7 = scalar_lea.hbm %s949_s30, 1024  ;;  %s713_s17 = scalar_lea.hbm %s996_s2, 2048 }
 0x13d   : > { %p710_p5 = scmp.ne.s32.totalorder %s949_s30, %s709_s7  ;;  %p714_p12 = scmp.lt.s32.totalorder %s949_s30, %s996_s2 }
 0x13e   : > { %p715_p13 = scmp.lt.s32.totalorder %s713_s17, %s709_s7 }
 0x13f   : > { %p711_p11 = pnand %p710_p5, %p1012_p1 }
 0x140   : > { %p716_p4 = por %p715_p13, %p714_p12 }
 0x141   : > { %p712_p6 = pneg %p711_p11 }
 0x143   : > { %p717_p0 = pnand %p716_p4, %p712_p6 }
 0x145   : > { %720 = shalt.err (!%p717_p0)
}
 0x146   : > { %s774_s29 = smov 512   ;;  %s775_s20 = smov 1024  }
 0x147   : > { %s776_s23 = smov 32  }
 0x148   : > { %549 = dma.vmem_to_hbm [thread:$0]  (%p1012_p1), %s951_s16, 1024, %s949_s30, %s415_s13, %s774_s29, %s775_s20, %s776_s23  }
 0x149 PF: > { %s443_s5 = sand.u32 1, %s751_s9   ;;  %p1013_p2 = scmp.ne.s32.totalorder %s1004_s22, 0 }
 0x14a   : > { %p1014_p3 = scmp.ge.s32.totalorder %s763_s12, 2  ;;  %s444_s24 = scalar_lea.sflag [#allocation4], %s443_s5 }
 0x14c   : > { %p560_p7 = pnand %p1014_p3, %p1013_p2 }
 0x14e   : > { %p561_p8 = pneg %p560_p7 }
 0x150   : > { %746 = dma.done.wait (%p561_p8), %s444_s24, 1024  }
 0x151   : > { %748 = vsyncadd (%p561_p8), %s444_s24, 4294966272  ;;  %p16_p9 = scmp.ge.s32.totalorder %s817_s15, 4   ;;  %s1015_s9 = smov %s755_s10 }
 0x152   : > { %s1016_s10 = smov %s759_s11  ;;  %s1017_s11 = smov %s829_s18 }
 0x153   : > { %s1018_s12 = smov %s817_s15  ;;  %18 = sbr.rel (!%p16_p9) target bundleno = 6 (0x6), region = 78 }
 0x158   :  { %449 = vsyncpa [#allocation3], 1 }
 0x159   :  { %451 = vsyncpa [#allocation3 + $0x1], 1 }
 0x15a   :  { %452 = vsyncpa [#allocation6], 1 }
 0x15b   :  { %454 = vsyncpa [#allocation6 + $0x1], 1 }
 0x15c   :  { %455 = vsyncpa [#allocation4], 1 }
 0x15d   :  { %457 = vsyncpa [#allocation4 + $0x1], 1 }

</bundles_post_ra>
